<compile_context>
chip_gen: v5e
topology: v5e:2x2
jax: 0.10.0
libtpu: 0.0.40
codegen_flags: <defaults>
</compile_context>

<pallas_src>
import functools

import jax
import jax.numpy as jnp
import numpy as np
from jax import lax
from jax.experimental import pallas as pl
from jax.experimental.pallas import tpu as pltpu


def lstm_kernel(x_ref, wih_ref, whh_ref, b_ref, wlin_ref, blin_ref, out_ref,
                gx_ref, h_ref, c_ref, *, seq_len, mask_tail):
    """One (batch-block, time-chunk) grid step of the LSTM recurrence.

    x_ref:    (Tc, Bb, I)   time-major input chunk (bf16 or f32)
    wih_ref:  (I, 4H)       input->gates weights, transposed, gate order (i,f,o,g)
    whh_ref:  (H, 4H)       hidden->gates weights, transposed, gate order (i,f,o,g)
    b_ref:    (1, 4H)       b_ih + b_hh combined (f32), permuted to (i,f,o,g)
    wlin_ref: (H, O)        final linear weight (transposed, f32)
    blin_ref: (1, O)        final linear bias (f32)
    out_ref:  (Bb, O)       predictions from the last hidden state (written on last chunk)
    gx_ref:   (Tc, Bb, 4H)  VMEM scratch: staged input projection (+bias), f32
    h_ref:    (Bb, H)       VMEM scratch: hidden-state carry across time chunks
    c_ref:    (Bb, H)       VMEM scratch: cell-state carry across time chunks
    """
    Tc, Bb, I = x_ref.shape
    H = whh_ref.shape[0]
    tb = pl.program_id(1)

    @pl.when(tb == 0)
    def _init():
        h_ref[...] = jnp.zeros_like(h_ref)
        c_ref[...] = jnp.zeros_like(c_ref)

    # Whole-chunk input projection in ONE MXU matmul, bias folded in once, then a single
    # contiguous store into the time-major scratch (no per-timestep strided staging).
    x = x_ref[...]                                                        # (Tc, Bb, I)
    gx = jnp.dot(x.reshape(Tc * Bb, I), wih_ref[...],
                 preferred_element_type=jnp.float32) + b_ref[...]         # (Tc*Bb, 4H) f32
    gx_ref[...] = gx.reshape(Tc, Bb, 4 * H)

    whh = whh_ref[...]                                                    # (H, 4H)
    t_base = tb * Tc

    def step(t, carry):
        h, c = carry
        gates = gx_ref[t] + jnp.dot(h.astype(whh.dtype), whh,
                                    preferred_element_type=jnp.float32)   # (Bb, 4H) f32
        # Gate column order is (i, f, o, g) (permuted in the wrapper).
        if 4 * H <= 128:
            # 4H fits in one vreg lane-width: two full-width EUP passes are cheapest.
            sig = jax.nn.sigmoid(gates)
            tnh = jnp.tanh(gates)
            i_g = sig[:, 0 * H:1 * H]
            f_g = sig[:, 1 * H:2 * H]
            o_g = sig[:, 2 * H:3 * H]
            g_g = tnh[:, 3 * H:4 * H]
        else:
            # Sigmoid on one contiguous 3H slice, tanh on one contiguous H slice:
            # ~45% less EUP work on the serial critical path for large H.
            sig = jax.nn.sigmoid(gates[:, :3 * H])
            g_g = jnp.tanh(gates[:, 3 * H:])
            i_g = sig[:, 0 * H:1 * H]
            f_g = sig[:, 1 * H:2 * H]
            o_g = sig[:, 2 * H:3 * H]
        c_new = f_g * c + i_g * g_g
        h_new = o_g * jnp.tanh(c_new)
        if mask_tail:
            # Zero-padded tail steps must not advance the state.
            valid = (t_base + t) < seq_len
            h_new = jnp.where(valid, h_new, h)
            c_new = jnp.where(valid, c_new, c)
        return h_new, c_new

    # Short static trip count; unroll so the per-step MXU latency overlaps across steps.
    h, c = lax.fori_loop(0, Tc, step, (h_ref[...], c_ref[...]), unroll=min(Tc, 8))
    h_ref[...] = h
    c_ref[...] = c

    @pl.when(tb == pl.num_programs(1) - 1)
    def _final():
        pred = jnp.dot(h, wlin_ref[...], preferred_element_type=jnp.float32) + blin_ref[...]
        out_ref[...] = pred.astype(out_ref.dtype)


def lstm_model_forward(x, w_ih, w_hh, b_ih, b_hh, w_lin, b_lin,
                       *, matmul_dtype=jnp.bfloat16, max_t_chunk=256):
    """Mirrors LSTMModel.forward(x) -> (B, output_size).

    x: (B, T, I) (PyTorch batch_first). Weights in PyTorch layout:
    w_ih (4H, I), w_hh (4H, H), biases (4H,), w_lin (O, H), b_lin (O,).
    NOTE: for best MXU/VPU utilisation pack batch to >= 8 (sublane width) at the caller.
    """
    B, T, I = x.shape
    H = w_hh.shape[1]
    O = w_lin.shape[0]
    four_h = 4 * H

    # Reorder PyTorch gate blocks (i, f, g, o) -> (i, f, o, g) so sigmoid/tanh act on
    # contiguous column spans inside the kernel. Bias permuted consistently.
    perm = np.concatenate([np.arange(0, 2 * H),
                           np.arange(3 * H, 4 * H),
                           np.arange(2 * H, 3 * H)])
    wih_t = jnp.asarray(w_ih, jnp.float32).T[:, perm].astype(matmul_dtype)   # (I, 4H)
    whh_t = jnp.asarray(w_hh, jnp.float32).T[:, perm].astype(matmul_dtype)   # (H, 4H)
    b2d = (jnp.asarray(b_ih, jnp.float32) + jnp.asarray(b_hh, jnp.float32))[perm]
    b2d = b2d.reshape(1, four_h)                                             # (1, 4H) f32
    wlin_t = jnp.asarray(w_lin, jnp.float32).T                               # (H, O)
    blin2d = jnp.asarray(b_lin, jnp.float32).reshape(1, O)                   # (1, O)

    # v7x: give the second TensorCore half the batch when each half keeps >= 8 sublanes.
    b_block = B // 2 if (B >= 16 and B % 16 == 0) else B
    nb = B // b_block

    # Time chunk: leading (non-tiled) dim -> no %8 constraint. Bound gx scratch (<= 8 MiB)
    # so total VMEM stays well under v7x's 64 MiB even for production-sized H.
    gx_step_bytes = max(1, b_block * four_h * 4)
    t_chunk = max(1, min(T, max_t_chunk, (8 * 1024 * 1024) // gx_step_bytes))
    nt = pl.cdiv(T, t_chunk)
    t_pad = nt * t_chunk

    # Time-major input (single XLA transpose in HBM); zero-pad tail, masked in-kernel.
    xt = jnp.transpose(jnp.asarray(x, jnp.float32), (1, 0, 2)).astype(matmul_dtype)
    if t_pad != T:
        xt = jnp.pad(xt, ((0, t_pad - T), (0, 0), (0, 0)))

    # Explicit VMEM accounting (double-buffered blocks + scratch), clamped to 64 MiB.
    def _nbytes(shape, dtype):
        return int(np.prod(shape)) * jnp.dtype(dtype).itemsize

    block_bytes = (_nbytes((t_chunk, b_block, I), matmul_dtype)
                   + _nbytes((I, four_h), matmul_dtype)
                   + _nbytes((H, four_h), matmul_dtype)
                   + _nbytes((1, four_h), jnp.float32)
                   + _nbytes((H, O), jnp.float32)
                   + _nbytes((1, O), jnp.float32)
                   + _nbytes((b_block, O), jnp.float32))
    scratch_bytes = (_nbytes((t_chunk, b_block, four_h), jnp.float32)
                     + 2 * _nbytes((b_block, H), jnp.float32))
    vmem_limit = int(min(64 * 1024 * 1024,
                         max(16 * 1024 * 1024, 2 * (2 * block_bytes + scratch_bytes))))

    kernel = functools.partial(lstm_kernel, seq_len=T, mask_tail=(t_pad != T))

    grid_spec = pltpu.PrefetchScalarGridSpec(
        num_scalar_prefetch=0,
        grid=(nb, nt),
        in_specs=[
            pl.BlockSpec((t_chunk, b_block, I), lambda bb, tb: (tb, bb, 0)),  # x (time-major)
            pl.BlockSpec((I, four_h), lambda bb, tb: (0, 0)),                 # W_ih^T resident
            pl.BlockSpec((H, four_h), lambda bb, tb: (0, 0)),                 # W_hh^T resident
            pl.BlockSpec((1, four_h), lambda bb, tb: (0, 0)),                 # bias   resident
            pl.BlockSpec((H, O), lambda bb, tb: (0, 0)),                      # W_lin^T resident
            pl.BlockSpec((1, O), lambda bb, tb: (0, 0)),                      # b_lin   resident
        ],
        out_specs=pl.BlockSpec((b_block, O), lambda bb, tb: (bb, 0)),         # written on last chunk
        scratch_shapes=[
            pltpu.VMEM((t_chunk, b_block, four_h), jnp.float32),              # staged input proj
            pltpu.VMEM((b_block, H), jnp.float32),                            # h carry
            pltpu.VMEM((b_block, H), jnp.float32),                            # c carry
        ],
    )
    return pl.pallas_call(
        kernel,
        out_shape=jax.ShapeDtypeStruct((B, O), jnp.float32),
        grid_spec=grid_spec,
        compiler_params=pltpu.CompilerParams(
            # batch blocks independent ("parallel", v7x 2nd TC); time carries h/c ("arbitrary").
            dimension_semantics=("parallel", "arbitrary"),
            vmem_limit_bytes=vmem_limit,
        ),
    )(xt, wih_t, whh_t, b2d, wlin_t, blin2d)


def lstm_model_ref(x, w_ih, w_hh, b_ih, b_hh, w_lin, b_lin):
    """Pure-JAX reference of PyTorch nn.LSTM(batch_first) + Linear(last step)."""
    B, T, I = x.shape
    H = w_hh.shape[1]
    h = jnp.zeros((B, H), jnp.float32)
    c = jnp.zeros((B, H), jnp.float32)
    for t in range(T):
        gates = x[:, t, :] @ w_ih.T + b_ih + h @ w_hh.T + b_hh
        i_g = jax.nn.sigmoid(gates[:, :H])
        f_g = jax.nn.sigmoid(gates[:, H:2 * H])
        g_g = jnp.tanh(gates[:, 2 * H:3 * H])
        o_g = jax.nn.sigmoid(gates[:, 3 * H:])
        c = f_g * c + i_g * g_g
        h = o_g * jnp.tanh(c)
    return h @ w_lin.T + b_lin


if __name__ == "__main__":
    # Small shapes consistent with the module: batch=2, seq=8, input_size=4,
    # hidden_size=32 (4H = 128 = one full lane width), output_size=1.
    B, T, I, H, O = 2, 8, 4, 32, 1

    key = jax.random.PRNGKey(0)
    k = jax.random.split(key, 8)
    scale = 1.0 / np.sqrt(H)  # PyTorch-style uniform(-1/sqrt(H), 1/sqrt(H))
    x = jax.random.normal(k[0], (B, T, I), jnp.float32)
    w_ih = jax.random.uniform(k[1], (4 * H, I), jnp.float32, -scale, scale)
    w_hh = jax.random.uniform(k[2], (4 * H, H), jnp.float32, -scale, scale)
    b_ih = jax.random.uniform(k[3], (4 * H,), jnp.float32, -scale, scale)
    b_hh = jax.random.uniform(k[4], (4 * H,), jnp.float32, -scale, scale)
    w_lin = jax.random.uniform(k[5], (O, H), jnp.float32, -scale, scale)
    b_lin = jax.random.uniform(k[6], (O,), jnp.float32, -scale, scale)

    ref = lstm_model_ref(x, w_ih, w_hh, b_ih, b_hh, w_lin, b_lin)

    # f32 matmul path: tight-tolerance correctness check against the f32 reference.
    out_f32 = jax.block_until_ready(
        lstm_model_forward(x, w_ih, w_hh, b_ih, b_hh, w_lin, b_lin,
                           matmul_dtype=jnp.float32))
    np.testing.assert_allclose(np.asarray(out_f32), np.asarray(ref),
                               rtol=1e-4, atol=1e-5)

    # bf16 matmul-input path (production default): looser tolerance for bf16 rounding.
    out_bf16 = jax.block_until_ready(
        lstm_model_forward(x, w_ih, w_hh, b_ih, b_hh, w_lin, b_lin,
                           matmul_dtype=jnp.bfloat16))
    np.testing.assert_allclose(np.asarray(out_bf16), np.asarray(ref),
                               rtol=3e-2, atol=3e-2)

    print("KERNEL_OK")
</pallas_src>

<mosaic_0001>
module attributes {stable_mosaic.version = 11 : i64} {
  func.func @lstm_kernel(%arg0: i32, %arg1: i32, %arg2: memref<8x2x4xf32, #tpu.memory_space<vmem>>, %arg3: memref<4x128xf32, #tpu.memory_space<vmem>>, %arg4: memref<32x128xf32, #tpu.memory_space<vmem>>, %arg5: memref<1x128xf32, #tpu.memory_space<vmem>>, %arg6: memref<32x1xf32, #tpu.memory_space<vmem>>, %arg7: memref<1x1xf32, #tpu.memory_space<vmem>>, %arg8: memref<2x1xf32, #tpu.memory_space<vmem>>, %arg9: memref<8x2x128xf32, #tpu.memory_space<vmem>>, %arg10: memref<2x32xf32, #tpu.memory_space<vmem>>, %arg11: memref<2x32xf32, #tpu.memory_space<vmem>>) attributes {dimension_semantics = [#tpu.dimension_semantics<parallel>, #tpu.dimension_semantics<arbitrary>], iteration_bounds = array<i64: 1, 1>, scalar_prefetch = 0 : i64, scratch_operands = 3 : i64, tpu.core_type = #tpu.core_type<tc>, window_params = [{transform_indices = @transform_0, window_bounds = array<i64: 8, 2, 4>}, {pipeline_mode = #tpu.pipeline_mode<synchronous>, transform_indices = @transform_1, window_bounds = array<i64: 4, 128>}, {pipeline_mode = #tpu.pipeline_mode<synchronous>, transform_indices = @transform_2, window_bounds = array<i64: 32, 128>}, {pipeline_mode = #tpu.pipeline_mode<synchronous>, transform_indices = @transform_3, window_bounds = array<i64: 1, 128>}, {pipeline_mode = #tpu.pipeline_mode<synchronous>, transform_indices = @transform_4, window_bounds = array<i64: 32, 1>}, {pipeline_mode = #tpu.pipeline_mode<synchronous>, transform_indices = @transform_5, window_bounds = array<i64: 1, 1>}, {transform_indices = @transform_6, window_bounds = array<i64: 2, 1>}]} {
    %c0_i32 = arith.constant 0 : i32
    %0 = arith.cmpi eq, %arg1, %c0_i32 : i32
    %1 = arith.extui %0 : i1 to i32
    %c0_i32_0 = arith.constant 0 : i32
    %2 = arith.cmpi ne, %1, %c0_i32_0 : i32
    scf.if %2 {
      %cst_55 = arith.constant 0.000000e+00 : f32
      %180 = vector.broadcast %cst_55 : f32 to vector<2x32xf32>
      %c0_56 = arith.constant 0 : index
      %c0_57 = arith.constant 0 : index
      %181 = vector.load %arg10[%c0_56, %c0_57] : memref<2x32xf32, #tpu.memory_space<vmem>>, vector<2x32xf32>
      tpu.vector_store %arg10[%c0_56, %c0_57], %180 {strides = array<i32>} : memref<2x32xf32, #tpu.memory_space<vmem>>, vector<2x32xf32>,
      %cst_58 = arith.constant 0.000000e+00 : f32
      %182 = vector.broadcast %cst_58 : f32 to vector<2x32xf32>
      %c0_59 = arith.constant 0 : index
      %c0_60 = arith.constant 0 : index
      %183 = vector.load %arg11[%c0_59, %c0_60] : memref<2x32xf32, #tpu.memory_space<vmem>>, vector<2x32xf32>
      tpu.vector_store %arg11[%c0_59, %c0_60], %182 {strides = array<i32>} : memref<2x32xf32, #tpu.memory_space<vmem>>, vector<2x32xf32>,
    } else {
    }
    %c0 = arith.constant 0 : index
    %c0_1 = arith.constant 0 : index
    %c0_2 = arith.constant 0 : index
    %3 = vector.load %arg2[%c0, %c0_1, %c0_2] : memref<8x2x4xf32, #tpu.memory_space<vmem>>, vector<8x2x4xf32>
    %4 = vector.shape_cast %3 : vector<8x2x4xf32> to vector<16x4xf32>
    %c0_3 = arith.constant 0 : index
    %c0_4 = arith.constant 0 : index
    %5 = vector.load %arg3[%c0_3, %c0_4] : memref<4x128xf32, #tpu.memory_space<vmem>>, vector<4x128xf32>
    %cst = arith.constant dense<0.000000e+00> : vector<16x128xf32>
    %6 = tpu.matmul %4, %5, %cst {dimension_numbers = #tpu.dot_dimension_numbers<[1], [0], [0], [1], [0, 0, 1, 1], [], []>} : vector<16x4xf32>, vector<4x128xf32>, vector<16x128xf32> -> vector<16x128xf32>
    %c0_5 = arith.constant 0 : index
    %c0_6 = arith.constant 0 : index
    %7 = vector.load %arg5[%c0_5, %c0_6] : memref<1x128xf32, #tpu.memory_space<vmem>>, vector<1x128xf32>
    %8 = vector.broadcast %7 : vector<1x128xf32> to vector<16x128xf32>
    %9 = arith.addf %6, %8 : vector<16x128xf32>
    %10 = vector.shape_cast %9 : vector<16x128xf32> to vector<8x2x128xf32>
    %c0_7 = arith.constant 0 : index
    %c0_8 = arith.constant 0 : index
    %c0_9 = arith.constant 0 : index
    %11 = vector.load %arg9[%c0_7, %c0_8, %c0_9] : memref<8x2x128xf32, #tpu.memory_space<vmem>>, vector<8x2x128xf32>
    tpu.vector_store %arg9[%c0_7, %c0_8, %c0_9], %10 {strides = array<i32>} : memref<8x2x128xf32, #tpu.memory_space<vmem>>, vector<8x2x128xf32>,
    %c0_10 = arith.constant 0 : index
    %c0_11 = arith.constant 0 : index
    %12 = vector.load %arg4[%c0_10, %c0_11] : memref<32x128xf32, #tpu.memory_space<vmem>>, vector<32x128xf32>
    %c0_12 = arith.constant 0 : index
    %c0_13 = arith.constant 0 : index
    %13 = vector.load %arg10[%c0_12, %c0_13] : memref<2x32xf32, #tpu.memory_space<vmem>>, vector<2x32xf32>
    %c0_14 = arith.constant 0 : index
    %c0_15 = arith.constant 0 : index
    %14 = vector.load %arg11[%c0_14, %c0_15] : memref<2x32xf32, #tpu.memory_space<vmem>>, vector<2x32xf32>
    %c0_i32_16 = arith.constant 0 : i32
    %15 = arith.index_cast %c0_i32_16 : i32 to index
    %c0_17 = arith.constant 0 : index
    %c0_18 = arith.constant 0 : index
    %16 = vector.load %arg9[%15, %c0_17, %c0_18] : memref<8x2x128xf32, #tpu.memory_space<vmem>>, vector<1x2x128xf32>
    %17 = vector.shape_cast %16 : vector<1x2x128xf32> to vector<2x128xf32>
    %cst_19 = arith.constant dense<0.000000e+00> : vector<2x128xf32>
    %18 = tpu.matmul %13, %12, %cst_19 {dimension_numbers = #tpu.dot_dimension_numbers<[1], [0], [0], [1], [0, 0, 1, 1], [], []>} : vector<2x32xf32>, vector<32x128xf32>, vector<2x128xf32> -> vector<2x128xf32>
    %19 = arith.addf %17, %18 : vector<2x128xf32>
    %20 = arith.negf %19 : vector<2x128xf32>
    %21 = math.exp %20 : vector<2x128xf32>
    %cst_20 = arith.constant 1.000000e+00 : f32
    %22 = vector.broadcast %cst_20 : f32 to vector<2x128xf32>
    %23 = arith.addf %22, %21 : vector<2x128xf32>
    %24 = arith.divf %22, %23 : vector<2x128xf32>
    %25 = math.tanh %19 : vector<2x128xf32>
    %26 = vector.extract_strided_slice %24 {offsets = [0, 0], sizes = [2, 32], strides = [1, 1]} : vector<2x128xf32> to vector<2x32xf32>
    %27 = vector.extract_strided_slice %24 {offsets = [0, 32], sizes = [2, 32], strides = [1, 1]} : vector<2x128xf32> to vector<2x32xf32>
    %28 = vector.extract_strided_slice %24 {offsets = [0, 64], sizes = [2, 32], strides = [1, 1]} : vector<2x128xf32> to vector<2x32xf32>
    %29 = vector.extract_strided_slice %25 {offsets = [0, 96], sizes = [2, 32], strides = [1, 1]} : vector<2x128xf32> to vector<2x32xf32>
    %30 = arith.mulf %27, %14 : vector<2x32xf32>
    %31 = arith.mulf %26, %29 : vector<2x32xf32>
    %32 = arith.addf %30, %31 : vector<2x32xf32>
    %33 = math.tanh %32 : vector<2x32xf32>
    %34 = arith.mulf %28, %33 : vector<2x32xf32>
    %c1_i32 = arith.constant 1 : i32
    %35 = arith.index_cast %c1_i32 : i32 to index
    %c0_21 = arith.constant 0 : index
    %c0_22 = arith.constant 0 : index
    %36 = vector.load %arg9[%35, %c0_21, %c0_22] : memref<8x2x128xf32, #tpu.memory_space<vmem>>, vector<1x2x128xf32>
    %37 = vector.shape_cast %36 : vector<1x2x128xf32> to vector<2x128xf32>
    %cst_23 = arith.constant dense<0.000000e+00> : vector<2x128xf32>
    %38 = tpu.matmul %34, %12, %cst_23 {dimension_numbers = #tpu.dot_dimension_numbers<[1], [0], [0], [1], [0, 0, 1, 1], [], []>} : vector<2x32xf32>, vector<32x128xf32>, vector<2x128xf32> -> vector<2x128xf32>
    %39 = arith.addf %37, %38 : vector<2x128xf32>
    %40 = arith.negf %39 : vector<2x128xf32>
    %41 = math.exp %40 : vector<2x128xf32>
    %cst_24 = arith.constant 1.000000e+00 : f32
    %42 = vector.broadcast %cst_24 : f32 to vector<2x128xf32>
    %43 = arith.addf %42, %41 : vector<2x128xf32>
    %44 = arith.divf %42, %43 : vector<2x128xf32>
    %45 = math.tanh %39 : vector<2x128xf32>
    %46 = vector.extract_strided_slice %44 {offsets = [0, 0], sizes = [2, 32], strides = [1, 1]} : vector<2x128xf32> to vector<2x32xf32>
    %47 = vector.extract_strided_slice %44 {offsets = [0, 32], sizes = [2, 32], strides = [1, 1]} : vector<2x128xf32> to vector<2x32xf32>
    %48 = vector.extract_strided_slice %44 {offsets = [0, 64], sizes = [2, 32], strides = [1, 1]} : vector<2x128xf32> to vector<2x32xf32>
    %49 = vector.extract_strided_slice %45 {offsets = [0, 96], sizes = [2, 32], strides = [1, 1]} : vector<2x128xf32> to vector<2x32xf32>
    %50 = arith.mulf %47, %32 : vector<2x32xf32>
    %51 = arith.mulf %46, %49 : vector<2x32xf32>
    %52 = arith.addf %50, %51 : vector<2x32xf32>
    %53 = math.tanh %52 : vector<2x32xf32>
    %54 = arith.mulf %48, %53 : vector<2x32xf32>
    %c2_i32 = arith.constant 2 : i32
    %55 = arith.index_cast %c2_i32 : i32 to index
    %c0_25 = arith.constant 0 : index
    %c0_26 = arith.constant 0 : index
    %56 = vector.load %arg9[%55, %c0_25, %c0_26] : memref<8x2x128xf32, #tpu.memory_space<vmem>>, vector<1x2x128xf32>
    %57 = vector.shape_cast %56 : vector<1x2x128xf32> to vector<2x128xf32>
    %cst_27 = arith.constant dense<0.000000e+00> : vector<2x128xf32>
    %58 = tpu.matmul %54, %12, %cst_27 {dimension_numbers = #tpu.dot_dimension_numbers<[1], [0], [0], [1], [0, 0, 1, 1], [], []>} : vector<2x32xf32>, vector<32x128xf32>, vector<2x128xf32> -> vector<2x128xf32>
    %59 = arith.addf %57, %58 : vector<2x128xf32>
    %60 = arith.negf %59 : vector<2x128xf32>
    %61 = math.exp %60 : vector<2x128xf32>
    %cst_28 = arith.constant 1.000000e+00 : f32
    %62 = vector.broadcast %cst_28 : f32 to vector<2x128xf32>
    %63 = arith.addf %62, %61 : vector<2x128xf32>
    %64 = arith.divf %62, %63 : vector<2x128xf32>
    %65 = math.tanh %59 : vector<2x128xf32>
    %66 = vector.extract_strided_slice %64 {offsets = [0, 0], sizes = [2, 32], strides = [1, 1]} : vector<2x128xf32> to vector<2x32xf32>
    %67 = vector.extract_strided_slice %64 {offsets = [0, 32], sizes = [2, 32], strides = [1, 1]} : vector<2x128xf32> to vector<2x32xf32>
    %68 = vector.extract_strided_slice %64 {offsets = [0, 64], sizes = [2, 32], strides = [1, 1]} : vector<2x128xf32> to vector<2x32xf32>
    %69 = vector.extract_strided_slice %65 {offsets = [0, 96], sizes = [2, 32], strides = [1, 1]} : vector<2x128xf32> to vector<2x32xf32>
    %70 = arith.mulf %67, %52 : vector<2x32xf32>
    %71 = arith.mulf %66, %69 : vector<2x32xf32>
    %72 = arith.addf %70, %71 : vector<2x32xf32>
    %73 = math.tanh %72 : vector<2x32xf32>
    %74 = arith.mulf %68, %73 : vector<2x32xf32>
    %c3_i32 = arith.constant 3 : i32
    %75 = arith.index_cast %c3_i32 : i32 to index
    %c0_29 = arith.constant 0 : index
    %c0_30 = arith.constant 0 : index
    %76 = vector.load %arg9[%75, %c0_29, %c0_30] : memref<8x2x128xf32, #tpu.memory_space<vmem>>, vector<1x2x128xf32>
    %77 = vector.shape_cast %76 : vector<1x2x128xf32> to vector<2x128xf32>
    %cst_31 = arith.constant dense<0.000000e+00> : vector<2x128xf32>
    %78 = tpu.matmul %74, %12, %cst_31 {dimension_numbers = #tpu.dot_dimension_numbers<[1], [0], [0], [1], [0, 0, 1, 1], [], []>} : vector<2x32xf32>, vector<32x128xf32>, vector<2x128xf32> -> vector<2x128xf32>
    %79 = arith.addf %77, %78 : vector<2x128xf32>
    %80 = arith.negf %79 : vector<2x128xf32>
    %81 = math.exp %80 : vector<2x128xf32>
    %cst_32 = arith.constant 1.000000e+00 : f32
    %82 = vector.broadcast %cst_32 : f32 to vector<2x128xf32>
    %83 = arith.addf %82, %81 : vector<2x128xf32>
    %84 = arith.divf %82, %83 : vector<2x128xf32>
    %85 = math.tanh %79 : vector<2x128xf32>
    %86 = vector.extract_strided_slice %84 {offsets = [0, 0], sizes = [2, 32], strides = [1, 1]} : vector<2x128xf32> to vector<2x32xf32>
    %87 = vector.extract_strided_slice %84 {offsets = [0, 32], sizes = [2, 32], strides = [1, 1]} : vector<2x128xf32> to vector<2x32xf32>
    %88 = vector.extract_strided_slice %84 {offsets = [0, 64], sizes = [2, 32], strides = [1, 1]} : vector<2x128xf32> to vector<2x32xf32>
    %89 = vector.extract_strided_slice %85 {offsets = [0, 96], sizes = [2, 32], strides = [1, 1]} : vector<2x128xf32> to vector<2x32xf32>
    %90 = arith.mulf %87, %72 : vector<2x32xf32>
    %91 = arith.mulf %86, %89 : vector<2x32xf32>
    %92 = arith.addf %90, %91 : vector<2x32xf32>
    %93 = math.tanh %92 : vector<2x32xf32>
    %94 = arith.mulf %88, %93 : vector<2x32xf32>
    %c4_i32 = arith.constant 4 : i32
    %95 = arith.index_cast %c4_i32 : i32 to index
    %c0_33 = arith.constant 0 : index
    %c0_34 = arith.constant 0 : index
    %96 = vector.load %arg9[%95, %c0_33, %c0_34] : memref<8x2x128xf32, #tpu.memory_space<vmem>>, vector<1x2x128xf32>
    %97 = vector.shape_cast %96 : vector<1x2x128xf32> to vector<2x128xf32>
    %cst_35 = arith.constant dense<0.000000e+00> : vector<2x128xf32>
    %98 = tpu.matmul %94, %12, %cst_35 {dimension_numbers = #tpu.dot_dimension_numbers<[1], [0], [0], [1], [0, 0, 1, 1], [], []>} : vector<2x32xf32>, vector<32x128xf32>, vector<2x128xf32> -> vector<2x128xf32>
    %99 = arith.addf %97, %98 : vector<2x128xf32>
    %100 = arith.negf %99 : vector<2x128xf32>
    %101 = math.exp %100 : vector<2x128xf32>
    %cst_36 = arith.constant 1.000000e+00 : f32
    %102 = vector.broadcast %cst_36 : f32 to vector<2x128xf32>
    %103 = arith.addf %102, %101 : vector<2x128xf32>
    %104 = arith.divf %102, %103 : vector<2x128xf32>
    %105 = math.tanh %99 : vector<2x128xf32>
    %106 = vector.extract_strided_slice %104 {offsets = [0, 0], sizes = [2, 32], strides = [1, 1]} : vector<2x128xf32> to vector<2x32xf32>
    %107 = vector.extract_strided_slice %104 {offsets = [0, 32], sizes = [2, 32], strides = [1, 1]} : vector<2x128xf32> to vector<2x32xf32>
    %108 = vector.extract_strided_slice %104 {offsets = [0, 64], sizes = [2, 32], strides = [1, 1]} : vector<2x128xf32> to vector<2x32xf32>
    %109 = vector.extract_strided_slice %105 {offsets = [0, 96], sizes = [2, 32], strides = [1, 1]} : vector<2x128xf32> to vector<2x32xf32>
    %110 = arith.mulf %107, %92 : vector<2x32xf32>
    %111 = arith.mulf %106, %109 : vector<2x32xf32>
    %112 = arith.addf %110, %111 : vector<2x32xf32>
    %113 = math.tanh %112 : vector<2x32xf32>
    %114 = arith.mulf %108, %113 : vector<2x32xf32>
    %c5_i32 = arith.constant 5 : i32
    %115 = arith.index_cast %c5_i32 : i32 to index
    %c0_37 = arith.constant 0 : index
    %c0_38 = arith.constant 0 : index
    %116 = vector.load %arg9[%115, %c0_37, %c0_38] : memref<8x2x128xf32, #tpu.memory_space<vmem>>, vector<1x2x128xf32>
    %117 = vector.shape_cast %116 : vector<1x2x128xf32> to vector<2x128xf32>
    %cst_39 = arith.constant dense<0.000000e+00> : vector<2x128xf32>
    %118 = tpu.matmul %114, %12, %cst_39 {dimension_numbers = #tpu.dot_dimension_numbers<[1], [0], [0], [1], [0, 0, 1, 1], [], []>} : vector<2x32xf32>, vector<32x128xf32>, vector<2x128xf32> -> vector<2x128xf32>
    %119 = arith.addf %117, %118 : vector<2x128xf32>
    %120 = arith.negf %119 : vector<2x128xf32>
    %121 = math.exp %120 : vector<2x128xf32>
    %cst_40 = arith.constant 1.000000e+00 : f32
    %122 = vector.broadcast %cst_40 : f32 to vector<2x128xf32>
    %123 = arith.addf %122, %121 : vector<2x128xf32>
    %124 = arith.divf %122, %123 : vector<2x128xf32>
    %125 = math.tanh %119 : vector<2x128xf32>
    %126 = vector.extract_strided_slice %124 {offsets = [0, 0], sizes = [2, 32], strides = [1, 1]} : vector<2x128xf32> to vector<2x32xf32>
    %127 = vector.extract_strided_slice %124 {offsets = [0, 32], sizes = [2, 32], strides = [1, 1]} : vector<2x128xf32> to vector<2x32xf32>
    %128 = vector.extract_strided_slice %124 {offsets = [0, 64], sizes = [2, 32], strides = [1, 1]} : vector<2x128xf32> to vector<2x32xf32>
    %129 = vector.extract_strided_slice %125 {offsets = [0, 96], sizes = [2, 32], strides = [1, 1]} : vector<2x128xf32> to vector<2x32xf32>
    %130 = arith.mulf %127, %112 : vector<2x32xf32>
    %131 = arith.mulf %126, %129 : vector<2x32xf32>
    %132 = arith.addf %130, %131 : vector<2x32xf32>
    %133 = math.tanh %132 : vector<2x32xf32>
    %134 = arith.mulf %128, %133 : vector<2x32xf32>
    %c6_i32 = arith.constant 6 : i32
    %135 = arith.index_cast %c6_i32 : i32 to index
    %c0_41 = arith.constant 0 : index
    %c0_42 = arith.constant 0 : index
    %136 = vector.load %arg9[%135, %c0_41, %c0_42] : memref<8x2x128xf32, #tpu.memory_space<vmem>>, vector<1x2x128xf32>
    %137 = vector.shape_cast %136 : vector<1x2x128xf32> to vector<2x128xf32>
    %cst_43 = arith.constant dense<0.000000e+00> : vector<2x128xf32>
    %138 = tpu.matmul %134, %12, %cst_43 {dimension_numbers = #tpu.dot_dimension_numbers<[1], [0], [0], [1], [0, 0, 1, 1], [], []>} : vector<2x32xf32>, vector<32x128xf32>, vector<2x128xf32> -> vector<2x128xf32>
    %139 = arith.addf %137, %138 : vector<2x128xf32>
    %140 = arith.negf %139 : vector<2x128xf32>
    %141 = math.exp %140 : vector<2x128xf32>
    %cst_44 = arith.constant 1.000000e+00 : f32
    %142 = vector.broadcast %cst_44 : f32 to vector<2x128xf32>
    %143 = arith.addf %142, %141 : vector<2x128xf32>
    %144 = arith.divf %142, %143 : vector<2x128xf32>
    %145 = math.tanh %139 : vector<2x128xf32>
    %146 = vector.extract_strided_slice %144 {offsets = [0, 0], sizes = [2, 32], strides = [1, 1]} : vector<2x128xf32> to vector<2x32xf32>
    %147 = vector.extract_strided_slice %144 {offsets = [0, 32], sizes = [2, 32], strides = [1, 1]} : vector<2x128xf32> to vector<2x32xf32>
    %148 = vector.extract_strided_slice %144 {offsets = [0, 64], sizes = [2, 32], strides = [1, 1]} : vector<2x128xf32> to vector<2x32xf32>
    %149 = vector.extract_strided_slice %145 {offsets = [0, 96], sizes = [2, 32], strides = [1, 1]} : vector<2x128xf32> to vector<2x32xf32>
    %150 = arith.mulf %147, %132 : vector<2x32xf32>
    %151 = arith.mulf %146, %149 : vector<2x32xf32>
    %152 = arith.addf %150, %151 : vector<2x32xf32>
    %153 = math.tanh %152 : vector<2x32xf32>
    %154 = arith.mulf %148, %153 : vector<2x32xf32>
    %c7_i32 = arith.constant 7 : i32
    %155 = arith.index_cast %c7_i32 : i32 to index
    %c0_45 = arith.constant 0 : index
    %c0_46 = arith.constant 0 : index
    %156 = vector.load %arg9[%155, %c0_45, %c0_46] : memref<8x2x128xf32, #tpu.memory_space<vmem>>, vector<1x2x128xf32>
    %157 = vector.shape_cast %156 : vector<1x2x128xf32> to vector<2x128xf32>
    %cst_47 = arith.constant dense<0.000000e+00> : vector<2x128xf32>
    %158 = tpu.matmul %154, %12, %cst_47 {dimension_numbers = #tpu.dot_dimension_numbers<[1], [0], [0], [1], [0, 0, 1, 1], [], []>} : vector<2x32xf32>, vector<32x128xf32>, vector<2x128xf32> -> vector<2x128xf32>
    %159 = arith.addf %157, %158 : vector<2x128xf32>
    %160 = arith.negf %159 : vector<2x128xf32>
    %161 = math.exp %160 : vector<2x128xf32>
    %cst_48 = arith.constant 1.000000e+00 : f32
    %162 = vector.broadcast %cst_48 : f32 to vector<2x128xf32>
    %163 = arith.addf %162, %161 : vector<2x128xf32>
    %164 = arith.divf %162, %163 : vector<2x128xf32>
    %165 = math.tanh %159 : vector<2x128xf32>
    %166 = vector.extract_strided_slice %164 {offsets = [0, 0], sizes = [2, 32], strides = [1, 1]} : vector<2x128xf32> to vector<2x32xf32>
    %167 = vector.extract_strided_slice %164 {offsets = [0, 32], sizes = [2, 32], strides = [1, 1]} : vector<2x128xf32> to vector<2x32xf32>
    %168 = vector.extract_strided_slice %164 {offsets = [0, 64], sizes = [2, 32], strides = [1, 1]} : vector<2x128xf32> to vector<2x32xf32>
    %169 = vector.extract_strided_slice %165 {offsets = [0, 96], sizes = [2, 32], strides = [1, 1]} : vector<2x128xf32> to vector<2x32xf32>
    %170 = arith.mulf %167, %152 : vector<2x32xf32>
    %171 = arith.mulf %166, %169 : vector<2x32xf32>
    %172 = arith.addf %170, %171 : vector<2x32xf32>
    %173 = math.tanh %172 : vector<2x32xf32>
    %174 = arith.mulf %168, %173 : vector<2x32xf32>
    %c8_i32 = arith.constant 8 : i32
    %c0_49 = arith.constant 0 : index
    %c0_50 = arith.constant 0 : index
    %175 = vector.load %arg10[%c0_49, %c0_50] : memref<2x32xf32, #tpu.memory_space<vmem>>, vector<2x32xf32>
    tpu.vector_store %arg10[%c0_49, %c0_50], %174 {strides = array<i32>} : memref<2x32xf32, #tpu.memory_space<vmem>>, vector<2x32xf32>,
    %c0_51 = arith.constant 0 : index
    %c0_52 = arith.constant 0 : index
    %176 = vector.load %arg11[%c0_51, %c0_52] : memref<2x32xf32, #tpu.memory_space<vmem>>, vector<2x32xf32>
    tpu.vector_store %arg11[%c0_51, %c0_52], %172 {strides = array<i32>} : memref<2x32xf32, #tpu.memory_space<vmem>>, vector<2x32xf32>,
    %c0_i32_53 = arith.constant 0 : i32
    %177 = arith.cmpi eq, %arg1, %c0_i32_53 : i32
    %178 = arith.extui %177 : i1 to i32
    %c0_i32_54 = arith.constant 0 : i32
    %179 = arith.cmpi ne, %178, %c0_i32_54 : i32
    scf.if %179 {
      %c0_55 = arith.constant 0 : index
      %c0_56 = arith.constant 0 : index
      %180 = vector.load %arg6[%c0_55, %c0_56] : memref<32x1xf32, #tpu.memory_space<vmem>>, vector<32x1xf32>
      %cst_57 = arith.constant dense<0.000000e+00> : vector<2x1xf32>
      %181 = tpu.matmul %174, %180, %cst_57 {dimension_numbers = #tpu.dot_dimension_numbers<[1], [0], [0], [1], [0, 0, 1, 1], [], []>} : vector<2x32xf32>, vector<32x1xf32>, vector<2x1xf32> -> vector<2x1xf32>
      %c0_58 = arith.constant 0 : index
      %c0_59 = arith.constant 0 : index
      %182 = vector.load %arg7[%c0_58, %c0_59] : memref<1x1xf32, #tpu.memory_space<vmem>>, vector<1x1xf32>
      %183 = vector.broadcast %182 : vector<1x1xf32> to vector<2x1xf32>
      %184 = arith.addf %181, %183 : vector<2x1xf32>
      %c0_60 = arith.constant 0 : index
      %c0_61 = arith.constant 0 : index
      %185 = vector.load %arg8[%c0_60, %c0_61] : memref<2x1xf32, #tpu.memory_space<vmem>>, vector<2x1xf32>
      tpu.vector_store %arg8[%c0_60, %c0_61], %184 {strides = array<i32>} : memref<2x1xf32, #tpu.memory_space<vmem>>, vector<2x1xf32>,
    } else {
    }
    return
  }
  func.func @transform_0(%arg0: i32, %arg1: i32) -> (i32, i32, i32) {
    %c0_i32 = arith.constant 0 : i32
    %c0_i32_0 = arith.constant 0 : i32
    return %arg1, %arg0, %c0_i32 : i32, i32, i32
  }
  func.func @transform_1(%arg0: i32, %arg1: i32) -> (i32, i32) {
    %c0_i32 = arith.constant 0 : i32
    %c0_i32_0 = arith.constant 0 : i32
    %c0_i32_1 = arith.constant 0 : i32
    return %c0_i32, %c0_i32_0 : i32, i32
  }
  func.func @transform_2(%arg0: i32, %arg1: i32) -> (i32, i32) {
    %c0_i32 = arith.constant 0 : i32
    %c0_i32_0 = arith.constant 0 : i32
    %c0_i32_1 = arith.constant 0 : i32
    return %c0_i32, %c0_i32_0 : i32, i32
  }
  func.func @transform_3(%arg0: i32, %arg1: i32) -> (i32, i32) {
    %c0_i32 = arith.constant 0 : i32
    %c0_i32_0 = arith.constant 0 : i32
    %c0_i32_1 = arith.constant 0 : i32
    return %c0_i32, %c0_i32_0 : i32, i32
  }
  func.func @transform_4(%arg0: i32, %arg1: i32) -> (i32, i32) {
    %c0_i32 = arith.constant 0 : i32
    %c0_i32_0 = arith.constant 0 : i32
    %c0_i32_1 = arith.constant 0 : i32
    return %c0_i32, %c0_i32_0 : i32, i32
  }
  func.func @transform_5(%arg0: i32, %arg1: i32) -> (i32, i32) {
    %c0_i32 = arith.constant 0 : i32
    %c0_i32_0 = arith.constant 0 : i32
    %c0_i32_1 = arith.constant 0 : i32
    return %c0_i32, %c0_i32_0 : i32, i32
  }
  func.func @transform_6(%arg0: i32, %arg1: i32) -> (i32, i32) {
    %c0_i32 = arith.constant 0 : i32
    %c0_i32_0 = arith.constant 0 : i32
    return %arg0, %c0_i32 : i32, i32
  }
}

</mosaic_0001>

<bundles_post_ra>
// kernel: tpu_custom_call.1
= control target key start
LH: loop header
LB: loop body
LE: loop exit
PB: predicated region body
PF: predicated region fallthrough
CT: control target
= control target key end

     0   :  { %vm75_vm0 = vcmask 1043456   ;;  %vm29_vm1 = vcmask 254976   ;;  %v792_v8 = vmov 0.0   ;;  %vm70_vm2 = vcmask 31744   ;;  %s793_s15 = smov 32   ;;  %s943_s1 = inlined_call_operand.vmem [shape: f32[4,128], index: 1, kind: input, shape index: {}]   ;;  %s944_s0 = inlined_call_operand.vmem [shape: f32[8,2,4], index: 0, kind: input, shape index: {}]   ;;  %s945_s2 = inlined_call_operand.vmem [shape: f32[32,128], index: 2, kind: input, shape index: {}]   ;;  %s946_s3 = inlined_call_operand.vmem [shape: f32[1,128], index: 3, kind: input, shape index: {}]   ;;  %s947_s4 = inlined_call_operand.vmem [shape: f32[32,1], index: 4, kind: input, shape index: {}]   ;;  %s948_s5 = inlined_call_operand.<no memory space> [shape: f32[1,1], index: 5, kind: input, shape index: {}]   ;;  %s949_s6 = inlined_call_operand.vmem [shape: f32[2,1], index: 6, kind: output, shape index: {}]  }
   0x1   :  { %v40_v0 = vld [vmem:[%s943_s1] sm:$0xf]  ;;  %v34_v3 = vld [vmem:[%s944_s0 + $0x4] sm:$0x3]  ;;  %v35_v4 = vld [vmem:[%s944_s0 + $0x6] sm:$0x3] }
   0x2   :  { %v32_v1 = vld [vmem:[%s944_s0] sm:$0x3]  ;;  %v33_v2 = vld [vmem:[%s944_s0 + $0x2] sm:$0x3]  ;;  %702 = vmatpush.msk.msra.mxu0 %vm75_vm0, %v40_v0  ;;  %v127_v5 = vld [vmem:[%s945_s2 + $0x18] sm:$0xff]  ;;  %vm131_vm3 = vcmask 261120  }
   0x3   :  { %53 = vst [vmem:[#allocation1] ss:$4 sm:$0xff] %v32_v1  ;;  %v126_v6 = vld [vmem:[%s945_s2 + $0x10] sm:$0xff]  ;;  %147 = vmatpush.msra.mxu1 %v127_v5  ;;  %216 = vmatpush.msra.mxu2 %v127_v5  ;;  %v125_v7 = vld [vmem:[%s945_s2 + $0x8] sm:$0xff]  ;;  %v124_v9 = vld [vmem:[%s945_s2] sm:$0xff] }
   0x4   :  { %55 = vst [vmem:[#allocation1 + $0x1] ss:$4 sm:$0xff] %v33_v2  ;;  %281 = vmatpush.msra.mxu3 %v127_v5  ;;  %541 = vmatpush.msrb.mxu0 %v127_v5  ;;  %v865_v12 = vld [vmem:[%s946_s3] ss:$0 sm:$0xff]  ;;  %s794_s3 = smov 64  }
   0x5   :  { %57 = vst [vmem:[#allocation1 + $0x2] ss:$4 sm:$0xff] %v34_v3  ;;  %148 = vmatpush.msra.mxu1 %v126_v6  ;;  %217 = vmatpush.msra.mxu2 %v126_v6 }
   0x6   :  { %59 = vst [vmem:[#allocation1 + $0x3] ss:$4 sm:$0xff] %v35_v4  ;;  %282 = vmatpush.msra.mxu3 %v126_v6  ;;  %542 = vmatpush.msrb.mxu0 %v126_v6 }
   0x7   :  { %30 = vst.msk [vmem:[#allocation3] sm:$0x3] %vm29_vm1, %v792_v8  ;;  %149 = vmatpush.msra.mxu1 %v125_v7  ;;  %218 = vmatpush.msra.mxu2 %v125_v7 }
   0x8   :  { %31 = vst.msk [vmem:[#allocation4] sm:$0x3] %vm29_vm1, %v792_v8  ;;  %283 = vmatpush.msra.mxu3 %v125_v7  ;;  %543 = vmatpush.msrb.mxu0 %v125_v7 }
   0x9   :  { %150 = vmatpush.msra.mxu1 %v124_v9  ;;  %219 = vmatpush.msra.mxu2 %v124_v9 }
   0xa   :  { %284 = vmatpush.msra.mxu3 %v124_v9  ;;  %544 = vmatpush.msrb.mxu0 %v124_v9 }
   0xb   :  { %346 = vmatpush.msrb.mxu1 %v127_v5  ;;  %411 = vmatpush.msrb.mxu2 %v127_v5 }
   0xc   :  { %476 = vmatpush.msrb.mxu3 %v127_v5 }
   0xd   :  { %v68_v10 = vld.sshfl [vmem:[#allocation1] sm:$0xff pattern:$0x73625140]  ;;  %347 = vmatpush.msrb.mxu1 %v126_v6  ;;  %412 = vmatpush.msrb.mxu2 %v126_v6 }
   0xe   :  { %703 = vmatmul.msk.f32.vlgmr.msra.gmra.mxu0 %vm70_vm2, %v68_v10  ;;  %v128_v11 = vld [vmem:[#allocation3] sm:$0x3]  ;;  %477 = vmatpush.msrb.mxu3 %v126_v6 }
   0xf   :  { %705 = vmatmul.msk.f32.vlgmr.msra.gmra.mxu1 %vm131_vm3, %v128_v11  ;;  %413 = vmatpush.msrb.mxu2 %v125_v7  ;;  %v129_v22 = vld [vmem:[#allocation4] sm:$0x3] }
  0x10   :  { %348 = vmatpush.msrb.mxu1 %v125_v7  ;;  %478 = vmatpush.msrb.mxu3 %v125_v7 }
  0x11   :  { %414 = vmatpush.msrb.mxu2 %v124_v9 }
  0x12   :  { %349 = vmatpush.msrb.mxu1 %v124_v9  ;;  %479 = vmatpush.msrb.mxu3 %v124_v9 }
  0x14   :  { %606 = vmatpush.msra.mxu1 %v127_v5 }
  0x16   :  { %607 = vmatpush.msra.mxu1 %v126_v6 }
  0x18   :  { %608 = vmatpush.msra.mxu1 %v125_v7 }
  0x1a   :  { %609 = vmatpush.msra.mxu1 %v124_v9 }
  0x8b   :  { %v96_v13 = vpop.f32.mrf.mxu0 }
  0x8c   :  { %v97_v14 = vadd.f32 %v865_v12, %v96_v13  ;;  %v152_v18 = vpop.f32.mrf.mxu1 }
  0x8e   :  { %v104_v15 = vrot.slane %v97_v14, 2  ;;  %v105_v16 = vrot.slane %v97_v14, 4  ;;  %v106_v17 = vrot.slane %v97_v14, 6  ;;  %116 = vst [vmem:[#allocation2] sm:$0x3] %v97_v14 }
  0x90   :  { %117 = vst [vmem:[#allocation2 + $0x2] sm:$0x3] %v104_v15 }
  0x91   :  { %118 = vst [vmem:[#allocation2 + $0x4] sm:$0x3] %v105_v16 }
  0x92   :  { %119 = vst [vmem:[#allocation2 + $0x6] sm:$0x3] %v106_v17 }
  0x95   :  { %v130_v19 = vld [vmem:[#allocation2] sm:$0x3] }
  0x96   :  { %v155_v20 = vadd.f32 %v152_v18, %v130_v19 }
  0x97   :  { %v198_v46 = vld [vmem:[#allocation2 + $0x2] sm:$0x3] }
  0x98   :  { %728 = vtanh.f32 %v155_v20  ;;  %v706_v23 = vmul.f32 -1.442695, %v155_v20  ;;  %v263_v8 = vld [vmem:[#allocation2 + $0x4] sm:$0x3] }
  0x9a   :  { %730 = vpow2.f32 %v706_v23 }
  0x9e   :  { %v729_v21 = vpop.eup %728 }
  0x9f   :  { %182 = vrot.lane.b32.xlu0 %v729_v21, %s793_s15 }
  0xa0   :  { %v731_v24 = vpop.eup %730 }
  0xa1   :  { %v159_v25 = vadd.f32 1.0, %v731_v24 }
  0xa3   :  { %732 = vrcp.f32 %v159_v25  ;;  %v171_v31 = vand.u32 2147483648, %v159_v25  ;;  %vm165_vm5 = vweird.f32 %v159_v25  ;;  %v169_v32 = vand.u32 2147483647, %v159_v25 }
  0xa5   :  { %v172_v34 = vor.u32 1.1754944e-38, %v171_v31  ;;  %vm170_vm7 = vcmp.eq.f32.partialorder %v169_v32, 8.507059e+37 }
  0xa7   :  { %177 = vrot.lane.b32.xlu0 %v129_v22, %s793_s15 }
  0xa9   :  { %v733_v26 = vpop.eup %732 }
  0xaa   :  { %v161_v27 = vmul.f32 %v733_v26, %v159_v25  ;;  %vm166_vm4 = vweird.f32 %v733_v26 }
  0xab   :  { %vm167_vm6 = vmor %vm165_vm5, %vm166_vm4 }
  0xac   :  { %v162_v28 = vsub.f32 1.0, %v161_v27 }
  0xae   :  { %v163_v29 = vmul.f32 %v733_v26, %v162_v28 }
  0xb0   :  { %v164_v30 = vadd.f32 %v733_v26, %v163_v29 }
  0xb2   :  { %v168_v33 = vsel %vm167_vm6, %v733_v26, %v164_v30 }
  0xb3   :  { %v173_v36 = vsel %vm170_vm7, %v172_v34, %v168_v33 }
 0x111   :  { %v183_v35 = vpop.permute.xlu0 %182 }
 0x112   :  { %v185_v37 = vmul.f32 %v183_v35, %v173_v36  ;;  %v328_v35 = vld [vmem:[#allocation2 + $0x6] sm:$0x3] }
 0x114   :  { %187 = vrot.lane.b32.xlu1 %v185_v37, %s793_s15 }
 0x119   :  { %v178_v38 = vpop.permute.xlu0 %177 }
 0x11a   :  { %v180_v39 = vmul.f32 %v178_v38, %v173_v36 }
 0x186   :  { %v188_v40 = vpop.permute.xlu1 %187 }
 0x187   :  { %v190_v41 = vadd.f32 %v188_v40, %v180_v39 }
 0x189   :  { %734 = vtanh.f32 %v190_v41 }
 0x18f   :  { %v735_v42 = vpop.eup %734 }
 0x190   :  { %193 = vrot.lane.b32.xlu1 %v735_v42, %s793_s15 }
 0x202   :  { %v194_v43 = vpop.permute.xlu1 %193 }
 0x203   :  { %v196_v44 = vmul.f32 %v194_v43, %v173_v36 }
 0x205   :  { %200 = vrot.lane.b32.xlu2 %v196_v44, %s794_s3 }
 0x25f   :  { %v201_v45 = vpop.permute.xlu2 %200 }
 0x260   :  { %707 = vmatmul.msk.f32.vlgmr.msra.gmra.mxu2 %vm131_vm3, %v201_v45 }
 0x2e3   :  { %v221_v47 = vpop.f32.mrf.mxu2 }
 0x2e4   :  { %v224_v48 = vadd.f32 %v221_v47, %v198_v46 }
 0x2e6   :  { %736 = vtanh.f32 %v224_v48  ;;  %v708_v50 = vmul.f32 -1.442695, %v224_v48 }
 0x2e8   :  { %738 = vpow2.f32 %v708_v50 }
 0x2ec   :  { %v737_v49 = vpop.eup %736 }
 0x2ed   :  { %247 = vrot.lane.b32.xlu2 %v737_v49, %s793_s15 }
 0x2ee   :  { %v739_v51 = vpop.eup %738 }
 0x2ef   :  { %v228_v52 = vadd.f32 1.0, %v739_v51 }
 0x2f1   :  { %740 = vrcp.f32 %v228_v52  ;;  %v240_v58 = vand.u32 2147483648, %v228_v52  ;;  %vm234_vm9 = vweird.f32 %v228_v52  ;;  %v238_v59 = vand.u32 2147483647, %v228_v52 }
 0x2f3   :  { %v241_v61 = vor.u32 1.1754944e-38, %v240_v58  ;;  %vm239_vm11 = vcmp.eq.f32.partialorder %v238_v59, 8.507059e+37  ;;  %v36_v58 = vld [vmem:[%s944_s0 + $0x8] sm:$0x3]  ;;  %v37_v59 = vld [vmem:[%s944_s0 + $0xa] sm:$0x3] }
 0x2f4   :  { %61 = vst [vmem:[#allocation1 + $0x20] ss:$4 sm:$0xff] %v36_v58 }
 0x2f5   :  { %63 = vst [vmem:[#allocation1 + $0x21] ss:$4 sm:$0xff] %v37_v59 }
 0x2f7   :  { %v741_v53 = vpop.eup %740 }
 0x2f8   :  { %v230_v54 = vmul.f32 %v741_v53, %v228_v52  ;;  %vm235_vm8 = vweird.f32 %v741_v53 }
 0x2f9   :  { %vm236_vm10 = vmor %vm234_vm9, %vm235_vm8 }
 0x2fa   :  { %v231_v55 = vsub.f32 1.0, %v230_v54 }
 0x2fc   :  { %v232_v56 = vmul.f32 %v741_v53, %v231_v55 }
 0x2fe   :  { %v233_v57 = vadd.f32 %v741_v53, %v232_v56 }
 0x300   :  { %v237_v60 = vsel %vm236_vm10, %v741_v53, %v233_v57 }
 0x301   :  { %v242_v63 = vsel %vm239_vm11, %v241_v61, %v237_v60  ;;  %v38_v60 = vld [vmem:[%s944_s0 + $0xc] sm:$0x3]  ;;  %v39_v61 = vld [vmem:[%s944_s0 + $0xe] sm:$0x3]  ;;  %s795_s0 = smov 96  }
 0x302   :  { %v245_v1 = vmul.f32 %v242_v63, %v190_v41  ;;  %65 = vst [vmem:[#allocation1 + $0x22] ss:$4 sm:$0xff] %v38_v60 }
 0x303   :  { %67 = vst [vmem:[#allocation1 + $0x23] ss:$4 sm:$0xff] %v39_v61 }
 0x347   :  { %v248_v62 = vpop.permute.xlu2 %247 }
 0x348   :  { %v250_v0 = vmul.f32 %v248_v62, %v242_v63  ;;  %v69_v62 = vld.sshfl [vmem:[#allocation1 + $0x20] sm:$0xff pattern:$0x73625140] }
 0x349   :  { %704 = vmatmul.msk.f32.gmra.mxu0 %vm70_vm2, %v69_v62 }
 0x34a   :  { %252 = vrot.lane.b32.xlu0 %v250_v0, %s793_s15 }
 0x3bc   :  { %v253_v2 = vpop.permute.xlu0 %252 }
 0x3bd   :  { %v255_v3 = vadd.f32 %v253_v2, %v245_v1 }
 0x3bf   :  { %742 = vtanh.f32 %v255_v3 }
 0x3c5   :  { %v743_v4 = vpop.eup %742 }
 0x3c6   :  { %258 = vrot.lane.b32.xlu1 %v743_v4, %s793_s15  ;;  %v99_v1 = vpop.f32.mrf.mxu0 }
 0x3c7   :  { %v100_v2 = vadd.f32 %v865_v12, %v99_v1 }
 0x3c9   :  { %v108_v4 = vrot.slane %v100_v2, 4  ;;  %120 = vst [vmem:[#allocation2 + $0x8] sm:$0x3] %v100_v2 }
 0x3cb   :  { %122 = vst [vmem:[#allocation2 + $0xc] sm:$0x3] %v108_v4 }
 0x3d2   :  { %v523_v59 = vld [vmem:[#allocation2 + $0xc] sm:$0x3] }
 0x438   :  { %v259_v5 = vpop.permute.xlu1 %258 }
 0x439   :  { %v261_v6 = vmul.f32 %v259_v5, %v242_v63  ;;  %v109_v5 = vrot.slane %v100_v2, 6 }
 0x43b   :  { %265 = vrot.lane.b32.xlu2 %v261_v6, %s794_s3  ;;  %123 = vst [vmem:[#allocation2 + $0xe] sm:$0x3] %v109_v5 }
 0x495   :  { %v266_v7 = vpop.permute.xlu2 %265 }
 0x496   :  { %709 = vmatmul.msk.f32.vlgmr.msra.gmra.mxu3 %vm131_vm3, %v266_v7  ;;  %v393_v7 = vld [vmem:[#allocation2 + $0x8] sm:$0x3] }
 0x519   :  { %v286_v9 = vpop.f32.mrf.mxu3 }
 0x51a   :  { %v289_v10 = vadd.f32 %v286_v9, %v263_v8 }
 0x51c   :  { %744 = vtanh.f32 %v289_v10  ;;  %v710_v13 = vmul.f32 -1.442695, %v289_v10 }
 0x51e   :  { %746 = vpow2.f32 %v710_v13 }
 0x522   :  { %v745_v11 = vpop.eup %744 }
 0x523   :  { %312 = vrot.lane.b32.xlu0 %v745_v11, %s793_s15 }
 0x524   :  { %v747_v14 = vpop.eup %746 }
 0x525   :  { %v293_v15 = vadd.f32 1.0, %v747_v14 }
 0x527   :  { %748 = vrcp.f32 %v293_v15  ;;  %v305_v21 = vand.u32 2147483648, %v293_v15  ;;  %vm299_vm13 = vweird.f32 %v293_v15  ;;  %v303_v22 = vand.u32 2147483647, %v293_v15 }
 0x529   :  { %v306_v24 = vor.u32 1.1754944e-38, %v305_v21  ;;  %vm304_vm15 = vcmp.eq.f32.partialorder %v303_v22, 8.507059e+37 }
 0x52d   :  { %v749_v16 = vpop.eup %748 }
 0x52e   :  { %v295_v17 = vmul.f32 %v749_v16, %v293_v15  ;;  %vm300_vm12 = vweird.f32 %v749_v16 }
 0x52f   :  { %vm301_vm14 = vmor %vm299_vm13, %vm300_vm12 }
 0x530   :  { %v296_v18 = vsub.f32 1.0, %v295_v17 }
 0x532   :  { %v297_v19 = vmul.f32 %v749_v16, %v296_v18 }
 0x534   :  { %v298_v20 = vadd.f32 %v749_v16, %v297_v19 }
 0x536   :  { %v302_v23 = vsel %vm301_vm14, %v749_v16, %v298_v20 }
 0x537   :  { %v307_v26 = vsel %vm304_vm15, %v306_v24, %v302_v23 }
 0x538   :  { %v310_v28 = vmul.f32 %v307_v26, %v255_v3  ;;  %v107_v3 = vrot.slane %v100_v2, 2 }
 0x53a   :  { %121 = vst [vmem:[#allocation2 + $0xa] sm:$0x3] %v107_v3 }
 0x595   :  { %v313_v25 = vpop.permute.xlu0 %312 }
 0x596   :  { %v315_v27 = vmul.f32 %v313_v25, %v307_v26 }
 0x598   :  { %317 = vrot.lane.b32.xlu1 %v315_v27, %s793_s15 }
 0x60a   :  { %v318_v29 = vpop.permute.xlu1 %317 }
 0x60b   :  { %v320_v30 = vadd.f32 %v318_v29, %v310_v28 }
 0x60d   :  { %750 = vtanh.f32 %v320_v30 }
 0x613   :  { %v751_v31 = vpop.eup %750 }
 0x614   :  { %323 = vrot.lane.b32.xlu2 %v751_v31, %s793_s15 }
 0x66e   :  { %v324_v32 = vpop.permute.xlu2 %323 }
 0x66f   :  { %v326_v33 = vmul.f32 %v324_v32, %v307_v26 }
 0x671   :  { %330 = vrot.lane.b32.xlu0 %v326_v33, %s794_s3  ;;  %v458_v33 = vld [vmem:[#allocation2 + $0xa] sm:$0x3] }
 0x6e3   :  { %v331_v34 = vpop.permute.xlu0 %330 }
 0x6e4   :  { %711 = vmatmul.msk.f32.vlgmr.msrb.gmra.mxu1 %vm131_vm3, %v331_v34 }
 0x761   :  { %v351_v36 = vpop.f32.mrf.mxu1 }
 0x762   :  { %v354_v37 = vadd.f32 %v351_v36, %v328_v35 }
 0x764   :  { %752 = vtanh.f32 %v354_v37  ;;  %v712_v39 = vmul.f32 -1.442695, %v354_v37 }
 0x766   :  { %754 = vpow2.f32 %v712_v39 }
 0x76a   :  { %v753_v38 = vpop.eup %752 }
 0x76b   :  { %377 = vrot.lane.b32.xlu1 %v753_v38, %s793_s15 }
 0x76c   :  { %v755_v40 = vpop.eup %754 }
 0x76d   :  { %v358_v41 = vadd.f32 1.0, %v755_v40 }
 0x76f   :  { %756 = vrcp.f32 %v358_v41  ;;  %v370_v47 = vand.u32 2147483648, %v358_v41  ;;  %vm364_vm4 = vweird.f32 %v358_v41  ;;  %v368_v48 = vand.u32 2147483647, %v358_v41 }
 0x771   :  { %v371_v50 = vor.u32 1.1754944e-38, %v370_v47  ;;  %vm369_vm6 = vcmp.eq.f32.partialorder %v368_v48, 8.507059e+37 }
 0x775   :  { %v757_v42 = vpop.eup %756 }
 0x776   :  { %v360_v43 = vmul.f32 %v757_v42, %v358_v41  ;;  %vm365_vm0 = vweird.f32 %v757_v42 }
 0x777   :  { %vm366_vm5 = vmor %vm364_vm4, %vm365_vm0 }
 0x778   :  { %v361_v44 = vsub.f32 1.0, %v360_v43 }
 0x77a   :  { %v362_v45 = vmul.f32 %v757_v42, %v361_v44 }
 0x77c   :  { %v363_v46 = vadd.f32 %v757_v42, %v362_v45 }
 0x77e   :  { %v367_v49 = vsel %vm366_vm5, %v757_v42, %v363_v46 }
 0x77f   :  { %v372_v52 = vsel %vm369_vm6, %v371_v50, %v367_v49 }
 0x780   :  { %v375_v54 = vmul.f32 %v372_v52, %v320_v30 }
 0x7dd   :  { %v378_v51 = vpop.permute.xlu1 %377 }
 0x7de   :  { %v380_v53 = vmul.f32 %v378_v51, %v372_v52 }
 0x7e0   :  { %382 = vrot.lane.b32.xlu2 %v380_v53, %s793_s15 }
 0x83a   :  { %v383_v55 = vpop.permute.xlu2 %382 }
 0x83b   :  { %v385_v56 = vadd.f32 %v383_v55, %v375_v54 }
 0x83d   :  { %758 = vtanh.f32 %v385_v56 }
 0x843   :  { %v759_v57 = vpop.eup %758 }
 0x844   :  { %388 = vrot.lane.b32.xlu0 %v759_v57, %s793_s15 }
 0x8b6   :  { %v389_v63 = vpop.permute.xlu0 %388 }
 0x8b7   :  { %v391_v0 = vmul.f32 %v389_v63, %v372_v52 }
 0x8b9   :  { %395 = vrot.lane.b32.xlu1 %v391_v0, %s794_s3 }
 0x92b   :  { %v396_v6 = vpop.permute.xlu1 %395 }
 0x92c   :  { %713 = vmatmul.msk.f32.vlgmr.msrb.gmra.mxu2 %vm131_vm3, %v396_v6 }
 0x9af   :  { %v416_v8 = vpop.f32.mrf.mxu2 }
 0x9b0   :  { %v419_v9 = vadd.f32 %v416_v8, %v393_v7 }
 0x9b2   :  { %760 = vtanh.f32 %v419_v9  ;;  %v714_v11 = vmul.f32 -1.442695, %v419_v9 }
 0x9b4   :  { %762 = vpow2.f32 %v714_v11 }
 0x9b8   :  { %v761_v10 = vpop.eup %760 }
 0x9b9   :  { %442 = vrot.lane.b32.xlu2 %v761_v10, %s793_s15 }
 0x9ba   :  { %v763_v12 = vpop.eup %762 }
 0x9bb   :  { %v423_v13 = vadd.f32 1.0, %v763_v12 }
 0x9bd   :  { %764 = vrcp.f32 %v423_v13  ;;  %v435_v19 = vand.u32 2147483648, %v423_v13  ;;  %vm429_vm7 = vweird.f32 %v423_v13  ;;  %v433_v20 = vand.u32 2147483647, %v423_v13 }
 0x9bf   :  { %v436_v22 = vor.u32 1.1754944e-38, %v435_v19  ;;  %vm434_vm9 = vcmp.eq.f32.partialorder %v433_v20, 8.507059e+37 }
 0x9c3   :  { %v765_v14 = vpop.eup %764 }
 0x9c4   :  { %v425_v15 = vmul.f32 %v765_v14, %v423_v13  ;;  %vm430_vm2 = vweird.f32 %v765_v14 }
 0x9c5   :  { %vm431_vm8 = vmor %vm429_vm7, %vm430_vm2 }
 0x9c6   :  { %v426_v16 = vsub.f32 1.0, %v425_v15 }
 0x9c8   :  { %v427_v17 = vmul.f32 %v765_v14, %v426_v16 }
 0x9ca   :  { %v428_v18 = vadd.f32 %v765_v14, %v427_v17 }
 0x9cc   :  { %v432_v21 = vsel %vm431_vm8, %v765_v14, %v428_v18  ;;  %vm696_vm8 = vcmask 1024  }
 0x9cd   :  { %v437_v24 = vsel %vm434_vm9, %v436_v22, %v432_v21  ;;  %v588_v21 = vld [vmem:[#allocation2 + $0xe] sm:$0x3] }
 0x9ce   :  { %v440_v26 = vmul.f32 %v437_v24, %v385_v56 }
 0xa13   :  { %v443_v23 = vpop.permute.xlu2 %442 }
 0xa14   :  { %v445_v25 = vmul.f32 %v443_v23, %v437_v24 }
 0xa16   :  { %447 = vrot.lane.b32.xlu0 %v445_v25, %s793_s15 }
 0xa88   :  { %v448_v27 = vpop.permute.xlu0 %447 }
 0xa89   :  { %v450_v28 = vadd.f32 %v448_v27, %v440_v26 }
 0xa8b   :  { %766 = vtanh.f32 %v450_v28 }
 0xa91   :  { %v767_v29 = vpop.eup %766 }
 0xa92   :  { %453 = vrot.lane.b32.xlu1 %v767_v29, %s793_s15 }
 0xb04   :  { %v454_v30 = vpop.permute.xlu1 %453 }
 0xb05   :  { %v456_v31 = vmul.f32 %v454_v30, %v437_v24 }
 0xb07   :  { %460 = vrot.lane.b32.xlu2 %v456_v31, %s794_s3 }
 0xb61   :  { %v461_v32 = vpop.permute.xlu2 %460 }
 0xb62   :  { %715 = vmatmul.msk.f32.vlgmr.msrb.gmra.mxu3 %vm131_vm3, %v461_v32 }
 0xbe5   :  { %v481_v34 = vpop.f32.mrf.mxu3 }
 0xbe6   :  { %v484_v35 = vadd.f32 %v481_v34, %v458_v33 }
 0xbe8   :  { %768 = vtanh.f32 %v484_v35  ;;  %v716_v37 = vmul.f32 -1.442695, %v484_v35 }
 0xbea   :  { %770 = vpow2.f32 %v716_v37 }
 0xbee   :  { %v769_v36 = vpop.eup %768 }
 0xbef   :  { %507 = vrot.lane.b32.xlu0 %v769_v36, %s793_s15 }
 0xbf0   :  { %v771_v38 = vpop.eup %770 }
 0xbf1   :  { %v488_v39 = vadd.f32 1.0, %v771_v38 }
 0xbf3   :  { %772 = vrcp.f32 %v488_v39  ;;  %v500_v45 = vand.u32 2147483648, %v488_v39  ;;  %vm494_vm11 = vweird.f32 %v488_v39  ;;  %v498_v46 = vand.u32 2147483647, %v488_v39 }
 0xbf5   :  { %v501_v48 = vor.u32 1.1754944e-38, %v500_v45  ;;  %vm499_vm13 = vcmp.eq.f32.partialorder %v498_v46, 8.507059e+37  ;;  %v668_v45 = vld [vmem:[%s947_s4 + $0x10] sm:$0xff]  ;;  %v667_v46 = vld [vmem:[%s947_s4 + $0x8] sm:$0xff] }
 0xbf9   :  { %v773_v40 = vpop.eup %772 }
 0xbfa   :  { %v490_v41 = vmul.f32 %v773_v40, %v488_v39  ;;  %vm495_vm10 = vweird.f32 %v773_v40 }
 0xbfb   :  { %vm496_vm12 = vmor %vm494_vm11, %vm495_vm10 }
 0xbfc   :  { %v491_v42 = vsub.f32 1.0, %v490_v41 }
 0xbfe   :  { %v492_v43 = vmul.f32 %v773_v40, %v491_v42 }
 0xc00   :  { %v493_v44 = vadd.f32 %v773_v40, %v492_v43 }
 0xc02   :  { %v497_v47 = vsel %vm496_vm12, %v773_v40, %v493_v44  ;;  %v669_v44 = vld [vmem:[%s947_s4 + $0x18] sm:$0xff] }
 0xc03   :  { %v502_v50 = vsel %vm499_vm13, %v501_v48, %v497_v47  ;;  %688 = vmatpush.msra.mxu2 %v669_v44  ;;  %v666_v47 = vld [vmem:[%s947_s4] sm:$0xff] }
 0xc04   :  { %v505_v52 = vmul.f32 %v502_v50, %v450_v28 }
 0xc05   :  { %689 = vmatpush.msra.mxu2 %v668_v45 }
 0xc07   :  { %690 = vmatpush.msra.mxu2 %v667_v46 }
 0xc09   :  { %691 = vmatpush.msra.mxu2 %v666_v47 }
 0xc61   :  { %v508_v49 = vpop.permute.xlu0 %507 }
 0xc62   :  { %v510_v51 = vmul.f32 %v508_v49, %v502_v50 }
 0xc64   :  { %512 = vrot.lane.b32.xlu1 %v510_v51, %s793_s15  ;;  %v11_v51 = vstv %s948_s5 }
 0xc65   :  { %12 = vst [vmem:[#allocation5] sm:$0x1] %v11_v51 }
 0xcd6   :  { %v513_v53 = vpop.permute.xlu1 %512 }
 0xcd7   :  { %v515_v54 = vadd.f32 %v513_v53, %v505_v52  ;;  %v727_v53 = vld [vmem:[#allocation5] ss:$0 sm:$0xff] }
 0xcd9   :  { %774 = vtanh.f32 %v515_v54 }
 0xcdf   :  { %v775_v55 = vpop.eup %774 }
 0xce0   :  { %518 = vrot.lane.b32.xlu2 %v775_v55, %s793_s15 }
 0xd3a   :  { %v519_v56 = vpop.permute.xlu2 %518 }
 0xd3b   :  { %v521_v57 = vmul.f32 %v519_v56, %v502_v50 }
 0xd3d   :  { %525 = vrot.lane.b32.xlu0 %v521_v57, %s794_s3 }
 0xdaf   :  { %v526_v58 = vpop.permute.xlu0 %525 }
 0xdb0   :  { %717 = vmatmul.msk.f32.vlgmr.msrb.gmra.mxu0 %vm131_vm3, %v526_v58 }
 0xe2d   :  { %v546_v60 = vpop.f32.mrf.mxu0 }
 0xe2e   :  { %v549_v61 = vadd.f32 %v546_v60, %v523_v59 }
 0xe30   :  { %776 = vtanh.f32 %v549_v61  ;;  %v718_v63 = vmul.f32 -1.442695, %v549_v61 }
 0xe32   :  { %778 = vpow2.f32 %v718_v63 }
 0xe36   :  { %v777_v62 = vpop.eup %776 }
 0xe37   :  { %572 = vrot.lane.b32.xlu1 %v777_v62, %s793_s15 }
 0xe38   :  { %v779_v0 = vpop.eup %778 }
 0xe39   :  { %v553_v1 = vadd.f32 1.0, %v779_v0 }
 0xe3b   :  { %780 = vrcp.f32 %v553_v1  ;;  %v565_v7 = vand.u32 2147483648, %v553_v1  ;;  %vm559_vm15 = vweird.f32 %v553_v1  ;;  %v563_v8 = vand.u32 2147483647, %v553_v1 }
 0xe3d   :  { %v566_v10 = vor.u32 1.1754944e-38, %v565_v7  ;;  %vm564_vm4 = vcmp.eq.f32.partialorder %v563_v8, 8.507059e+37 }
 0xe41   :  { %v781_v2 = vpop.eup %780 }
 0xe42   :  { %v555_v3 = vmul.f32 %v781_v2, %v553_v1  ;;  %vm560_vm14 = vweird.f32 %v781_v2 }
 0xe43   :  { %vm561_vm0 = vmor %vm559_vm15, %vm560_vm14 }
 0xe44   :  { %v556_v4 = vsub.f32 1.0, %v555_v3 }
 0xe46   :  { %v557_v5 = vmul.f32 %v781_v2, %v556_v4 }
 0xe48   :  { %v558_v6 = vadd.f32 %v781_v2, %v557_v5 }
 0xe4a   :  { %v562_v9 = vsel %vm561_vm0, %v781_v2, %v558_v6 }
 0xe4b   :  { %v567_v12 = vsel %vm564_vm4, %v566_v10, %v562_v9 }
 0xe4c   :  { %v570_v14 = vmul.f32 %v567_v12, %v515_v54 }
 0xea9   :  { %v573_v11 = vpop.permute.xlu1 %572 }
 0xeaa   :  { %v575_v13 = vmul.f32 %v573_v11, %v567_v12 }
 0xeac   :  { %577 = vrot.lane.b32.xlu2 %v575_v13, %s793_s15 }
 0xf06   :  { %v578_v15 = vpop.permute.xlu2 %577 }
 0xf07   :  { %v580_v16 = vadd.f32 %v578_v15, %v570_v14 }
 0xf09   :  { %782 = vtanh.f32 %v580_v16 }
 0xf0f   :  { %v783_v17 = vpop.eup %782 }
 0xf10   :  { %583 = vrot.lane.b32.xlu0 %v783_v17, %s793_s15 }
 0xf82   :  { %v584_v18 = vpop.permute.xlu0 %583 }
 0xf83   :  { %v586_v19 = vmul.f32 %v584_v18, %v567_v12 }
 0xf85   :  { %590 = vrot.lane.b32.xlu1 %v586_v19, %s794_s3 }
 0xff7   :  { %v591_v20 = vpop.permute.xlu1 %590 }
 0xff8   :  { %719 = vmatmul.msk.f32.vlgmr.msra.gmra.mxu1 %vm131_vm3, %v591_v20 }
0x1075   :  { %v611_v22 = vpop.f32.mrf.mxu1 }
0x1076   :  { %v614_v23 = vadd.f32 %v611_v22, %v588_v21 }
0x1078   :  { %784 = vtanh.f32 %v614_v23  ;;  %v720_v25 = vmul.f32 -1.442695, %v614_v23 }
0x107a   :  { %786 = vpow2.f32 %v720_v25 }
0x107e   :  { %v785_v24 = vpop.eup %784 }
0x107f   :  { %637 = vrot.lane.b32.xlu2 %v785_v24, %s793_s15 }
0x1080   :  { %v787_v26 = vpop.eup %786 }
0x1081   :  { %v618_v27 = vadd.f32 1.0, %v787_v26 }
0x1083   :  { %788 = vrcp.f32 %v618_v27  ;;  %v630_v33 = vand.u32 2147483648, %v618_v27  ;;  %vm624_vm6 = vweird.f32 %v618_v27  ;;  %v628_v34 = vand.u32 2147483647, %v618_v27 }
0x1085   :  { %v631_v36 = vor.u32 1.1754944e-38, %v630_v33  ;;  %vm629_vm7 = vcmp.eq.f32.partialorder %v628_v34, 8.507059e+37 }
0x1089   :  { %v789_v28 = vpop.eup %788 }
0x108a   :  { %v620_v29 = vmul.f32 %v789_v28, %v618_v27  ;;  %vm625_vm5 = vweird.f32 %v789_v28 }
0x108b   :  { %vm626_vm2 = vmor %vm624_vm6, %vm625_vm5 }
0x108c   :  { %v621_v30 = vsub.f32 1.0, %v620_v29 }
0x108e   :  { %v622_v31 = vmul.f32 %v789_v28, %v621_v30 }
0x1090   :  { %v623_v32 = vadd.f32 %v789_v28, %v622_v31 }
0x1092   :  { %v627_v35 = vsel %vm626_vm2, %v789_v28, %v623_v32 }
0x1093   :  { %v632_v38 = vsel %vm629_vm7, %v631_v36, %v627_v35 }
0x1094   :  { %v635_v40 = vmul.f32 %v632_v38, %v580_v16 }
0x10d9   :  { %v638_v37 = vpop.permute.xlu2 %637 }
0x10da   :  { %v640_v39 = vmul.f32 %v638_v37, %v632_v38 }
0x10dc   :  { %642 = vrot.lane.b32.xlu0 %v640_v39, %s793_s15 }
0x114e   :  { %v643_v41 = vpop.permute.xlu0 %642 }
0x114f   :  { %v645_v42 = vadd.f32 %v643_v41, %v635_v40 }
0x1151   :  { %790 = vtanh.f32 %v645_v42  ;;  %659 = vrot.lane.b32.xlu0 %v645_v42, %s795_s0 }
0x1157   :  { %v791_v43 = vpop.eup %790 }
0x1158   :  { %648 = vrot.lane.b32.xlu1 %v791_v43, %s793_s15 }
0x11c3   :  { %v660_v48 = vpop.permute.xlu0 %659 }
0x11c4   :  { %662 = vst.msk [vmem:[#allocation4] sm:$0x3] %vm29_vm1, %v660_v48 }
0x11ca   :  { %v649_v49 = vpop.permute.xlu1 %648 }
0x11cb   :  { %v651_v50 = vmul.f32 %v649_v49, %v632_v38 }
0x11cd   :  { %653 = vrot.lane.b32.xlu2 %v651_v50, %s794_s3 }
0x1227   :  { %v654_v52 = vpop.permute.xlu2 %653 }
0x1228   :  { %657 = vst.msk [vmem:[#allocation3] sm:$0x3] %vm29_vm1, %v654_v52  ;;  %721 = vmatmul.msk.f32.vlgmr.msra.gmra.mxu2 %vm131_vm3, %v654_v52 }
0x12ab   :  { %v693_v54 = vpop.f32.mrf.mxu2 }
0x12ac   :  { %v694_v55 = vadd.f32 %v727_v53, %v693_v54 }
0x12ae   :  { %697 = vst.msk [vmem:[%s949_s6] sm:$0x3] %vm696_vm8, %v694_v55 }

</bundles_post_ra>
